<compile_context>
chip_gen: v6e
topology: v6e:2x2x1
jax: 0.10.0
libtpu: 0.0.40
codegen_flags: <defaults>
</compile_context>

<pallas_src>
import jax
import jax.numpy as jnp
from jax.experimental import pallas as pl
from jax.experimental.pallas import tpu as pltpu

PI = 3.14159                       # exact truncated constant used by the torch.jit.script gaussian()
SQRT_2PI = (2.0 * PI) ** 0.5

_LANE = 128
_SUBLANE = 8
# Conservative double-buffered VMEM budget: safe on v7x (64 MiB/TC physical,
# 32 MiB scoped default) and well inside v5e/v6e once vmem_limit_bytes is raised.
_VMEM_BUDGET_BYTES = 24 * 1024 * 1024
_VMEM_LIMIT_BYTES = 32 * 1024 * 1024   # raises v5e's 16 MiB scoped default; no-op headroom elsewhere
_MAX_TILE_M = 8192                     # per review: don't exceed ~8k rows even when budget allows


def _round_up(a, b):
    return ((a + b - 1) // b) * b


def gaussian_kernel(val_ref, const_ref, out_ref):
    # val_ref:   (tile_m, 1)  f32  -- per-row value mul*x + bias
    # const_ref: (8, Kp)      f32  -- row 0: mean, row 1: -0.5/std^2, row 2: 1/(sqrt(2*pi)*std)
    # out_ref:   (tile_m, Kp) out dtype
    val = val_ref[...]                               # (tile_m, 1)
    mean = const_ref[0:1, :]                         # (1, Kp)
    neg_half_inv_var = const_ref[1:2, :]             # (1, Kp)
    coeff = const_ref[2:3, :]                        # (1, Kp)
    d = val - mean                                   # broadcast -> (tile_m, Kp)
    out_ref[...] = (coeff * jnp.exp(neg_half_inv_var * (d * d))).astype(out_ref.dtype)


def gaussian_layer_forward(x, edge_types, means_w, stds_w, mul_w, bias_w, *, tile_m=None):
    """x: [B, N, N] float; edge_types: [B, N, N] int -> out [B, N, N, K] (dtype of means_w)."""
    B, N1, N2 = x.shape
    K = means_w.shape[-1]
    M = B * N1 * N2
    out_dtype = means_w.dtype
    out_bytes = jnp.dtype(out_dtype).itemsize

    # Keep the output lane-dense: pad K to a multiple of 128 if needed (coeff=0 in the pad).
    Kp = _round_up(K, _LANE)

    # --- JAX glue: dim-1 embedding gathers + per-row FMA ([M]-sized, fuses into one cheap pass) ---
    ids = edge_types.reshape(-1)
    mul = mul_w.reshape(-1)[ids].astype(jnp.float32)     # [M]
    bias = bias_w.reshape(-1)[ids].astype(jnp.float32)   # [M]
    xf = x.reshape(-1).astype(jnp.float32)               # [M]
    val = (mul * xf + bias).reshape(M, 1)                # [M, 1]

    # --- exact per-K constants precomputed once (no divides / -0.5 multiplies in the kernel) ---
    mean = means_w.astype(jnp.float32).reshape(K)
    std = jnp.abs(stds_w.astype(jnp.float32).reshape(K)) + 1e-5
    inv_std = 1.0 / std
    neg_half_inv_var = -0.5 * inv_std * inv_std
    coeff = inv_std / SQRT_2PI
    consts = jnp.zeros((_SUBLANE, Kp), jnp.float32)
    consts = consts.at[0, :K].set(mean)
    consts = consts.at[1, :K].set(neg_half_inv_var)
    consts = consts.at[2, :K].set(coeff)                 # pad lanes keep coeff = 0 -> output 0

    # --- tile sizing with explicit VMEM accounting ---
    # Per row (double-buffered): output block = 2 * Kp * out_bytes, plus the val block which is
    # padded to (tm, 128) f32 in VMEM = 2 * 128 * 4 bytes.  Consts (8, Kp) are negligible.
    bytes_per_row = 2 * Kp * out_bytes + 2 * _LANE * 4
    budget_rows = max(_SUBLANE, _VMEM_BUDGET_BYTES // bytes_per_row)
    if tile_m is None:
        tile_m = _MAX_TILE_M
    tm = min(tile_m, budget_rows, _MAX_TILE_M)
    tm = max(_SUBLANE, min(tm, _round_up(M, _SUBLANE)))   # don't exceed the (padded) problem size
    tm = _round_up(tm, _SUBLANE)
    grid_m = pl.cdiv(M, tm)
    # NOTE: for large M, grid_m >= 2 falls out naturally (tm <= 8192), so the single grid axis
    # shards across both v7x TensorCores via dimension_semantics=("parallel",).

    cost = pl.CostEstimate(
        flops=5 * M * Kp,
        transcendentals=M * Kp,
        bytes_accessed=M * Kp * out_bytes + M * 4 + _SUBLANE * Kp * 4,
    )

    out = pl.pallas_call(
        gaussian_kernel,
        out_shape=jax.ShapeDtypeStruct((M, Kp), out_dtype),
        grid_spec=pltpu.PrefetchScalarGridSpec(
            num_scalar_prefetch=0,
            grid=(grid_m,),
            in_specs=[
                pl.BlockSpec((tm, 1), lambda i: (i, 0)),       # per-row values
                pl.BlockSpec((_SUBLANE, Kp), lambda i: (0, 0)),  # resident constants
            ],
            out_specs=pl.BlockSpec((tm, Kp), lambda i: (i, 0)),
        ),
        compiler_params=pltpu.CompilerParams(
            dimension_semantics=("parallel",),
            vmem_limit_bytes=_VMEM_LIMIT_BYTES,
        ),
        cost_estimate=cost,
    )(val, consts)

    if Kp != K:
        out = out[:, :K]
    return out.reshape(B, N1, N2, K)


def reference_forward(x, edge_types, means_w, stds_w, mul_w, bias_w):
    """Pure-JAX reference matching the PyTorch module."""
    K = means_w.shape[-1]
    mul = mul_w[edge_types]                           # [B,N,N,1]
    bias = bias_w[edge_types]                         # [B,N,N,1]
    v = mul * x[..., None] + bias                     # [B,N,N,1]
    v = jnp.broadcast_to(v, v.shape[:-1] + (K,)).astype(jnp.float32)
    mean = means_w.astype(jnp.float32).reshape(-1)
    std = jnp.abs(stds_w.astype(jnp.float32).reshape(-1)) + 1e-5
    out = jnp.exp(-0.5 * ((v - mean) / std) ** 2) / (SQRT_2PI * std)
    return out.astype(means_w.dtype)


if __name__ == "__main__":
    K = 128
    EDGE_TYPES = 1024
    B, N = 2, 8

    key = jax.random.PRNGKey(0)
    k_means, k_stds, k_x, k_et = jax.random.split(key, 4)

    # parameter init mirrors the module's __init__
    means_w = jax.random.uniform(k_means, (1, K), jnp.float32, 0.0, 3.0)
    stds_w = jax.random.uniform(k_stds, (1, K), jnp.float32, 0.0, 3.0)
    mul_w = jnp.ones((EDGE_TYPES, 1), jnp.float32)      # nn.init.constant_(mul.weight, 1)
    bias_w = jnp.zeros((EDGE_TYPES, 1), jnp.float32)    # nn.init.constant_(bias.weight, 0)

    # inputs: pairwise distances [B, N, N] and edge-type ids [B, N, N]
    x = jnp.abs(jax.random.normal(k_x, (B, N, N), jnp.float32)) * 3.0
    edge_types = jax.random.randint(k_et, (B, N, N), 0, EDGE_TYPES, dtype=jnp.int32)

    out = gaussian_layer_forward(x, edge_types, means_w, stds_w, mul_w, bias_w)
    out = jax.block_until_ready(out)

    ref = reference_forward(x, edge_types, means_w, stds_w, mul_w, bias_w)
    assert out.shape == (B, N, N, K), out.shape
    assert out.dtype == means_w.dtype, out.dtype
    err = float(jnp.max(jnp.abs(out.astype(jnp.float32) - ref.astype(jnp.float32))))
    assert jnp.allclose(out, ref, atol=1e-5, rtol=1e-5), err

    print("KERNEL_OK")
</pallas_src>

<mosaic_0001>
module attributes {stable_mosaic.version = 11 : i64} {
  func.func @gaussian_kernel(%arg0: i32, %arg1: memref<128x1xf32, #tpu.memory_space<vmem>>, %arg2: memref<8x128xf32, #tpu.memory_space<vmem>>, %arg3: memref<128x128xf32, #tpu.memory_space<vmem>>) attributes {dimension_semantics = [#tpu.dimension_semantics<parallel>], iteration_bounds = array<i64: 1>, scalar_prefetch = 0 : i64, scratch_operands = 0 : i64, tpu.core_type = #tpu.core_type<tc>, window_params = [{transform_indices = @transform_0, window_bounds = array<i64: 128, 1>}, {pipeline_mode = #tpu.pipeline_mode<synchronous>, transform_indices = @transform_1, window_bounds = array<i64: 8, 128>}, {transform_indices = @transform_2, window_bounds = array<i64: 128, 128>}]} {
    %c0 = arith.constant 0 : index
    %c0_0 = arith.constant 0 : index
    %0 = vector.load %arg1[%c0, %c0_0] : memref<128x1xf32, #tpu.memory_space<vmem>>, vector<128x1xf32>
    %c0_1 = arith.constant 0 : index
    %c0_2 = arith.constant 0 : index
    %1 = vector.load %arg2[%c0_1, %c0_2] : memref<8x128xf32, #tpu.memory_space<vmem>>, vector<1x128xf32>
    %c1 = arith.constant 1 : index
    %c0_3 = arith.constant 0 : index
    %2 = vector.load %arg2[%c1, %c0_3] : memref<8x128xf32, #tpu.memory_space<vmem>>, vector<1x128xf32>
    %c2 = arith.constant 2 : index
    %c0_4 = arith.constant 0 : index
    %3 = vector.load %arg2[%c2, %c0_4] : memref<8x128xf32, #tpu.memory_space<vmem>>, vector<1x128xf32>
    %4 = vector.broadcast %0 : vector<128x1xf32> to vector<128x128xf32>
    %5 = vector.broadcast %1 : vector<1x128xf32> to vector<128x128xf32>
    %6 = arith.subf %4, %5 : vector<128x128xf32>
    %7 = arith.mulf %6, %6 : vector<128x128xf32>
    %8 = vector.broadcast %2 : vector<1x128xf32> to vector<128x128xf32>
    %9 = arith.mulf %8, %7 : vector<128x128xf32>
    %10 = math.exp %9 : vector<128x128xf32>
    %11 = vector.broadcast %3 : vector<1x128xf32> to vector<128x128xf32>
    %12 = arith.mulf %11, %10 : vector<128x128xf32>
    %c0_5 = arith.constant 0 : index
    %c0_6 = arith.constant 0 : index
    %13 = vector.load %arg3[%c0_5, %c0_6] : memref<128x128xf32, #tpu.memory_space<vmem>>, vector<128x128xf32>
    tpu.vector_store %arg3[%c0_5, %c0_6], %12 {strides = array<i32>} : memref<128x128xf32, #tpu.memory_space<vmem>>, vector<128x128xf32>,
    return
  }
  func.func @transform_0(%arg0: i32) -> (i32, i32) {
    %c0_i32 = arith.constant 0 : i32
    %c0_i32_0 = arith.constant 0 : i32
    return %arg0, %c0_i32 : i32, i32
  }
  func.func @transform_1(%arg0: i32) -> (i32, i32) {
    %c0_i32 = arith.constant 0 : i32
    %c0_i32_0 = arith.constant 0 : i32
    %c0_i32_1 = arith.constant 0 : i32
    return %c0_i32, %c0_i32_0 : i32, i32
  }
  func.func @transform_2(%arg0: i32) -> (i32, i32) {
    %c0_i32 = arith.constant 0 : i32
    %c0_i32_0 = arith.constant 0 : i32
    return %arg0, %c0_i32 : i32, i32
  }
}

</mosaic_0001>

<bundles_post_ra>
// kernel: tpu_custom_call.1
= control target key start
LH: loop header
LB: loop body
LE: loop exit
PB: predicated region body
PF: predicated region fallthrough
CT: control target
= control target key end

     0   :  { %v314_v2 = vmov 0   ;;  %s447_s0 = inlined_call_operand.vmem [shape: f32[128,1], index: 0, kind: input, shape index: {}]   ;;  %s448_s1 = inlined_call_operand.vmem [shape: f32[8,128], index: 1, kind: input, shape index: {}]   ;;  %s449_s2 = inlined_call_operand.hbm [shape: f32[128,128], index: 2, kind: output, shape index: {}]  }
   0x1   :  { %v14_v0 = vld [vmem:[%s447_s0 + $0x10] sm:$0xff]  ;;  %v12_v1 = vld [vmem:[%s447_s0] sm:$0xff]  ;;  %259 = vset.pattern.permute.xlu1 %v314_v2  ;;  %258 = vset.pattern.permute.xlu0 %v314_v2  ;;  %v15_v3 = vld [vmem:[%s447_s0 + $0x18] sm:$0xff] }
   0x2   :  { %43 = vperm.xlu1 %259, %v14_v0   ;;  %33 = vperm.xlu0 %258, %v12_v1   ;;  %v13_v4 = vld [vmem:[%s447_s0 + $0x8] sm:$0xff] }
   0x6   :  { %48 = vperm.xlu1 %259, %v15_v3   ;;  %38 = vperm.xlu0 %258, %v13_v4  }
   0x7   :  { %7 = vsyncpa [#allocation3], 0  ;;  %v17_v5 = vld [vmem:[%s447_s0 + $0x28] sm:$0xff]  ;;  %v16_v6 = vld [vmem:[%s447_s0 + $0x20] sm:$0xff] }
   0x8   :  { %v19_v7 = vld [vmem:[%s447_s0 + $0x38] sm:$0xff]  ;;  %v18_v8 = vld [vmem:[%s447_s0 + $0x30] sm:$0xff]  ;;  %v21_v9 = vld [vmem:[%s447_s0 + $0x48] sm:$0xff] }
   0x9   :  { %v20_v10 = vld [vmem:[%s447_s0 + $0x40] sm:$0xff]  ;;  %v23_v11 = vld [vmem:[%s447_s0 + $0x58] sm:$0xff]  ;;  %v22_v12 = vld [vmem:[%s447_s0 + $0x50] sm:$0xff] }
   0xa   :  { %58 = vperm.xlu1 %259, %v17_v5   ;;  %53 = vperm.xlu0 %258, %v16_v6   ;;  %v25_v13 = vld [vmem:[%s447_s0 + $0x68] sm:$0xff]  ;;  %v24_v14 = vld [vmem:[%s447_s0 + $0x60] sm:$0xff]  ;;  %v27_v15 = vld [vmem:[%s447_s0 + $0x78] sm:$0xff] }
   0xb   :  { %v26_v16 = vld [vmem:[%s447_s0 + $0x70] sm:$0xff]  ;;  %v384_v17 = vld [vmem:[%s448_s1] ss:$0 sm:$0xff]  ;;  %v391_v22 = vld [vmem:[%s448_s1 + $0x1] ss:$0 sm:$0xff] }
   0xc   :  { %v412_v0 = vld [vmem:[%s448_s1 + $0x2] ss:$0 sm:$0xff]  ;;  %s315_s1 = smov [#allocation2]  }
   0xd   :  { %s240_s18 = sshll.u32 %s315_s1, 4  ;;  %s241_s18 = int_to_ptr.vmem [resolvable:$true] %s240_s18 }
   0xe   :  { %68 = vperm.xlu1 %259, %v19_v7   ;;  %63 = vperm.xlu0 %258, %v18_v8   ;;  %s292_s19 = scalar_lea.vmem %s241_s18, 2048  ;;  %p297_p1 = scmp.lt.s32.totalorder %s241_s18, %s241_s18 }
   0xf   :  { %p293_p0 = scmp.ne.s32.totalorder %s241_s18, %s292_s19  ;;  %p298_p2 = scmp.lt.s32.totalorder %s292_s19, %s292_s19 }
  0x11   :  { %p299_p3 = por %p298_p2, %p297_p1 }
  0x12   :  { %78 = vperm.xlu1 %259, %v21_v9   ;;  %73 = vperm.xlu0 %258, %v20_v10  }
  0x13   :  { %p300_p4 = pnand %p299_p3, %p293_p0 }
  0x16   :  { %88 = vperm.xlu1 %259, %v23_v11   ;;  %83 = vperm.xlu0 %258, %v22_v12  }
  0x1a   :  { %98 = vperm.xlu1 %259, %v25_v13   ;;  %93 = vperm.xlu0 %258, %v24_v14  }
  0x1e   :  { %108 = vperm.xlu1 %259, %v27_v15   ;;  %103 = vperm.xlu0 %258, %v26_v16  }
  0x7d   :  { %v44_v18 = vpop.permute.xlu1 %43  ;;  %v34_v19 = vpop.permute.xlu0 %33 }
  0x7e   :  { %v117_v20 = vsub.f32 %v44_v18, %v384_v17  ;;  %v115_v21 = vsub.f32 %v34_v19, %v384_v17 }
  0x80   :  { %v133_v23 = vmul.f32 %v117_v20, %v117_v20  ;;  %v131_v24 = vmul.f32 %v115_v21, %v115_v21 }
  0x81   :  { %v49_v25 = vpop.permute.xlu1 %48  ;;  %v39_v26 = vpop.permute.xlu0 %38 }
  0x82   :  { %v153_v27 = vmul.f32 %v391_v22, %v133_v23  ;;  %v151_v28 = vmul.f32 %v391_v22, %v131_v24  ;;  %v118_v29 = vsub.f32 %v49_v25, %v384_v17  ;;  %v116_v30 = vsub.f32 %v39_v26, %v384_v17 }
  0x84   :  { %v171_v31 = vmul.f32 1.442695, %v153_v27  ;;  %v167_v32 = vmul.f32 1.442695, %v151_v28  ;;  %v134_v33 = vmul.f32 %v118_v29, %v118_v29  ;;  %v132_v34 = vmul.f32 %v116_v30, %v116_v30 }
  0x85   :  { %v59_v35 = vpop.permute.xlu1 %58  ;;  %v54_v36 = vpop.permute.xlu0 %53 }
  0x86   :  { %260 = vpow2.f32 %v171_v31  ;;  %v154_v37 = vmul.f32 %v391_v22, %v134_v33  ;;  %v152_v38 = vmul.f32 %v391_v22, %v132_v34  ;;  %v120_v39 = vsub.f32 %v59_v35, %v384_v17 }
  0x87   :  { %262 = vpow2.f32 %v167_v32  ;;  %v119_v40 = vsub.f32 %v54_v36, %v384_v17 }
  0x88   :  { %v173_v41 = vmul.f32 1.442695, %v154_v37  ;;  %v169_v42 = vmul.f32 1.442695, %v152_v38  ;;  %v136_v43 = vmul.f32 %v120_v39, %v120_v39 }
  0x89   :  { %v135_v44 = vmul.f32 %v119_v40, %v119_v40  ;;  %v69_v45 = vpop.permute.xlu1 %68  ;;  %v64_v46 = vpop.permute.xlu0 %63 }
  0x8a   :  { %264 = vpow2.f32 %v173_v41  ;;  %v156_v47 = vmul.f32 %v391_v22, %v136_v43  ;;  %v122_v48 = vsub.f32 %v69_v45, %v384_v17  ;;  %v121_v49 = vsub.f32 %v64_v46, %v384_v17 }
  0x8b   :  { %266 = vpow2.f32 %v169_v42  ;;  %v155_v50 = vmul.f32 %v391_v22, %v135_v44 }
  0x8c   :  { %v177_v51 = vmul.f32 1.442695, %v156_v47  ;;  %v138_v52 = vmul.f32 %v122_v48, %v122_v48  ;;  %v137_v53 = vmul.f32 %v121_v49, %v121_v49 }
  0x8d   :  { %v175_v54 = vmul.f32 1.442695, %v155_v50  ;;  %v79_v55 = vpop.permute.xlu1 %78  ;;  %v74_v56 = vpop.permute.xlu0 %73 }
  0x8e   :  { %268 = vpow2.f32 %v177_v51  ;;  %v158_v57 = vmul.f32 %v391_v22, %v138_v52  ;;  %v157_v58 = vmul.f32 %v391_v22, %v137_v53  ;;  %v124_v59 = vsub.f32 %v79_v55, %v384_v17 }
  0x8f   :  { %270 = vpow2.f32 %v175_v54  ;;  %v123_v60 = vsub.f32 %v74_v56, %v384_v17 }
  0x90   :  { %v181_v61 = vmul.f32 1.442695, %v158_v57  ;;  %v179_v62 = vmul.f32 1.442695, %v157_v58  ;;  %v140_v63 = vmul.f32 %v124_v59, %v124_v59 }
  0x91   :  { %v139_v1 = vmul.f32 %v123_v60, %v123_v60  ;;  %v89_v2 = vpop.permute.xlu1 %88  ;;  %v84_v3 = vpop.permute.xlu0 %83 }
  0x92   :  { %272 = vpow2.f32 %v181_v61  ;;  %v160_v4 = vmul.f32 %v391_v22, %v140_v63  ;;  %v126_v5 = vsub.f32 %v89_v2, %v384_v17  ;;  %v125_v6 = vsub.f32 %v84_v3, %v384_v17 }
  0x93   :  { %v261_v7 = vpop.eup %260  ;;  %274 = vpow2.f32 %v179_v62  ;;  %v159_v8 = vmul.f32 %v391_v22, %v139_v1 }
  0x94   :  { %v263_v9 = vpop.eup %262  ;;  %v205_v10 = vmul.f32 %v261_v7, %v412_v0  ;;  %v185_v11 = vmul.f32 1.442695, %v160_v4  ;;  %v142_v12 = vmul.f32 %v126_v5, %v126_v5  ;;  %v141_v13 = vmul.f32 %v125_v6, %v125_v6 }
  0x95   :  { %v203_v14 = vmul.f32 %v263_v9, %v412_v0  ;;  %v183_v15 = vmul.f32 1.442695, %v159_v8  ;;  %v99_v16 = vpop.permute.xlu1 %98  ;;  %v94_v18 = vpop.permute.xlu0 %93 }
  0x96   :  { %221 = vst [vmem:[#allocation2 + $0x10] sm:$0xff] %v205_v10  ;;  %276 = vpow2.f32 %v185_v11  ;;  %v162_v19 = vmul.f32 %v391_v22, %v142_v12  ;;  %v161_v20 = vmul.f32 %v391_v22, %v141_v13  ;;  %v128_v21 = vsub.f32 %v99_v16, %v384_v17 }
  0x97   :  { %v265_v23 = vpop.eup %264  ;;  %219 = vst [vmem:[#allocation2] sm:$0xff] %v203_v14  ;;  %278 = vpow2.f32 %v183_v15  ;;  %v127_v24 = vsub.f32 %v94_v18, %v384_v17 }
  0x98   :  { %v267_v25 = vpop.eup %266  ;;  %v206_v26 = vmul.f32 %v265_v23, %v412_v0  ;;  %v189_v27 = vmul.f32 1.442695, %v162_v19  ;;  %v187_v28 = vmul.f32 1.442695, %v161_v20  ;;  %v144_v29 = vmul.f32 %v128_v21, %v128_v21 }
  0x99   :  { %v204_v30 = vmul.f32 %v267_v25, %v412_v0  ;;  %v143_v31 = vmul.f32 %v127_v24, %v127_v24  ;;  %v109_v32 = vpop.permute.xlu1 %108  ;;  %v104_v33 = vpop.permute.xlu0 %103 }
  0x9a   :  { %222 = vst [vmem:[#allocation2 + $0x18] sm:$0xff] %v206_v26  ;;  %280 = vpow2.f32 %v189_v27  ;;  %v164_v34 = vmul.f32 %v391_v22, %v144_v29  ;;  %v130_v35 = vsub.f32 %v109_v32, %v384_v17  ;;  %v129_v36 = vsub.f32 %v104_v33, %v384_v17 }
  0x9b   :  { %v269_v37 = vpop.eup %268  ;;  %220 = vst [vmem:[#allocation2 + $0x8] sm:$0xff] %v204_v30  ;;  %282 = vpow2.f32 %v187_v28  ;;  %v163_v38 = vmul.f32 %v391_v22, %v143_v31 }
  0x9c   :  { %v271_v39 = vpop.eup %270  ;;  %v208_v40 = vmul.f32 %v269_v37, %v412_v0  ;;  %v193_v41 = vmul.f32 1.442695, %v164_v34  ;;  %v146_v42 = vmul.f32 %v130_v35, %v130_v35  ;;  %v145_v43 = vmul.f32 %v129_v36, %v129_v36 }
  0x9d   :  { %v207_v44 = vmul.f32 %v271_v39, %v412_v0  ;;  %v191_v45 = vmul.f32 1.442695, %v163_v38 }
  0x9e   :  { %224 = vst [vmem:[#allocation2 + $0x28] sm:$0xff] %v208_v40  ;;  %284 = vpow2.f32 %v193_v41  ;;  %v166_v46 = vmul.f32 %v391_v22, %v146_v42  ;;  %v165_v17 = vmul.f32 %v391_v22, %v145_v43 }
  0x9f   :  { %v273_v47 = vpop.eup %272  ;;  %223 = vst [vmem:[#allocation2 + $0x20] sm:$0xff] %v207_v44  ;;  %286 = vpow2.f32 %v191_v45 }
  0xa0   :  { %v275_v48 = vpop.eup %274  ;;  %v210_v49 = vmul.f32 %v273_v47, %v412_v0  ;;  %v197_v50 = vmul.f32 1.442695, %v166_v46  ;;  %v195_v51 = vmul.f32 1.442695, %v165_v17 }
  0xa1   :  { %v209_v52 = vmul.f32 %v275_v48, %v412_v0 }
  0xa2   :  { %226 = vst [vmem:[#allocation2 + $0x38] sm:$0xff] %v210_v49  ;;  %288 = vpow2.f32 %v197_v50 }
  0xa3   :  { %v277_v53 = vpop.eup %276  ;;  %225 = vst [vmem:[#allocation2 + $0x30] sm:$0xff] %v209_v52  ;;  %290 = vpow2.f32 %v195_v51 }
  0xa4   :  { %v279_v54 = vpop.eup %278  ;;  %v212_v55 = vmul.f32 %v277_v53, %v412_v0 }
  0xa5   :  { %v211_v22 = vmul.f32 %v279_v54, %v412_v0 }
  0xa6   :  { %228 = vst [vmem:[#allocation2 + $0x48] sm:$0xff] %v212_v55 }
  0xa7   :  { %v281_v56 = vpop.eup %280  ;;  %227 = vst [vmem:[#allocation2 + $0x40] sm:$0xff] %v211_v22 }
  0xa8   :  { %v283_v57 = vpop.eup %282  ;;  %v214_v58 = vmul.f32 %v281_v56, %v412_v0 }
  0xa9   :  { %v213_v59 = vmul.f32 %v283_v57, %v412_v0 }
  0xaa   :  { %230 = vst [vmem:[#allocation2 + $0x58] sm:$0xff] %v214_v58 }
  0xab   :  { %v285_v60 = vpop.eup %284  ;;  %229 = vst [vmem:[#allocation2 + $0x50] sm:$0xff] %v213_v59 }
  0xac   :  { %v287_v61 = vpop.eup %286  ;;  %v216_v62 = vmul.f32 %v285_v60, %v412_v0 }
  0xad   :  { %v215_v63 = vmul.f32 %v287_v61, %v412_v0 }
  0xae   :  { %232 = vst [vmem:[#allocation2 + $0x68] sm:$0xff] %v216_v62 }
  0xaf   :  { %v289_v1 = vpop.eup %288  ;;  %231 = vst [vmem:[#allocation2 + $0x60] sm:$0xff] %v215_v63 }
  0xb0   :  { %v291_v2 = vpop.eup %290  ;;  %v218_v3 = vmul.f32 %v289_v1, %v412_v0 }
  0xb1   :  { %v217_v4 = vmul.f32 %v291_v2, %v412_v0 }
  0xb2   :  { %234 = vst [vmem:[#allocation2 + $0x78] sm:$0xff] %v218_v3 }
  0xb3   :  { %233 = vst [vmem:[#allocation2 + $0x70] sm:$0xff] %v217_v4 }
  0xb4   :  { %303 = shalt.err (!%p300_p4)
}
  0xb5   :  { %s316_s20 = smov 128   ;;  %s317_s21 = smov 8  }
  0xb6   :  { %246 = dma.vmem_to_hbm [thread:$0]  %s241_s18, 2048, %s449_s2, [#allocation3], %s316_s20, %s316_s20, %s317_s21  }
  0xb7   :  { %312 = dma.done.wait [#allocation3], 2048  }
  0xb8   :  { %313 = vsyncadd [#allocation3], 4294965248 }
  0xb9   :  { %250 = vsyncpa [#allocation3], 1 }

</bundles_post_ra>
